<compile_context>
chip_gen: v5e
topology: v5e:2x2
jax: 0.10.0
libtpu: 0.0.40
codegen_flags: <defaults>
</compile_context>

<pallas_src>
import jax
import jax.numpy as jnp
from jax.experimental import pallas as pl
from jax.experimental.pallas import tpu as pltpu


# ---------------------------------------------------------------------------
# Kernels
# ---------------------------------------------------------------------------
def _matmul_kernel_f32_out(x_ref, w_ref, o_ref):
    """K-tiled matmul, accumulating directly into a float32 output block."""
    @pl.when(pl.program_id(2) == 0)
    def _():
        o_ref[...] = jnp.zeros_like(o_ref)

    o_ref[...] += jnp.dot(
        x_ref[...], w_ref[...], preferred_element_type=jnp.float32
    )


def _matmul_kernel_scratch(x_ref, w_ref, o_ref, acc_ref):
    """K-tiled matmul with an f32 scratch accumulator (low-precision output)."""
    @pl.when(pl.program_id(2) == 0)
    def _():
        acc_ref[...] = jnp.zeros_like(acc_ref)

    acc_ref[...] += jnp.dot(
        x_ref[...], w_ref[...], preferred_element_type=jnp.float32
    )

    @pl.when(pl.program_id(2) == pl.num_programs(2) - 1)
    def _():
        o_ref[...] = acc_ref[...].astype(o_ref.dtype)


def _matmul_kernel_resident_w(x_ref, w_ref, o_ref):
    """Weight resident in VMEM: one MXU pass per M tile, no K grid axis."""
    o_ref[...] = jnp.dot(
        x_ref[...], w_ref[...], preferred_element_type=jnp.float32
    ).astype(o_ref.dtype)


# ---------------------------------------------------------------------------
# Tiling helpers
# ---------------------------------------------------------------------------
def _round_up(x, m):
    return ((x + m - 1) // m) * m


def _sublane_align(dtype):
    # f32 -> 8 rows, bf16 -> 16, int8/fp8 -> 32 (packed sublanes).
    return max(8, 32 // jnp.dtype(dtype).itemsize)


def _largest_divisor_tile(dim_pad, target, align):
    """Largest multiple of `align` dividing `dim_pad`, <= max(target, align)."""
    assert dim_pad % align == 0
    q = dim_pad // align
    t = max(target // align, 1)
    while t > 1 and q % t != 0:
        t -= 1
    return t * align


def _vmem_info():
    """(physical VMEM, safe scoped limit, tk target) for the local chip."""
    try:
        cap = pltpu.get_tpu_info().vmem_capacity_bytes
    except Exception:
        cap = 64 << 20  # be conservative (v7x has 64 MiB per TensorCore)
    if cap >= (96 << 20):            # v5e / v6e: 128 MiB physical VMEM
        return cap, 96 << 20, 2048
    return cap, 56 << 20, 1024       # v7x: 64 MiB physical VMEM


# ---------------------------------------------------------------------------
# Wrapper
# ---------------------------------------------------------------------------
def my_linear(x, weight, bias=None, *, use_bf16_mxu=False):
    """Forward pass of MyLinear: out = x @ weight.

    `bias` is accepted for API parity but intentionally NOT added, because the
    original PyTorch forward discards the result of `x + self.bias`.
    """
    del bias  # reference forward discards the bias add

    orig_shape = x.shape
    in_dim, out_dim = weight.shape
    assert orig_shape[-1] == in_dim, "last axis of x must equal in_dim"

    out_dtype = jnp.result_type(x.dtype, weight.dtype)

    if use_bf16_mxu:
        # bf16 is the MXU-native operand dtype on v5e/v6e/v7x; f32 inputs run
        # the MXU in multi-pass mode.  Accumulation stays in f32 either way.
        x = x.astype(jnp.bfloat16)
        weight = weight.astype(jnp.bfloat16)

    x2d = x.reshape(-1, in_dim)
    M, K = x2d.shape
    N = out_dim

    dsize = jnp.dtype(x2d.dtype).itemsize
    out_dsize = jnp.dtype(out_dtype).itemsize
    _, vmem_limit, tk_target = _vmem_info()
    budget = int(vmem_limit * 0.85)
    use_f32_out = out_dtype == jnp.float32

    # ---- padded, MXU/lane-aligned shapes ---------------------------------
    m_align = 128 if M >= 128 else _sublane_align(x2d.dtype)
    M_pad = _round_up(M, m_align)
    K_pad = _round_up(K, 128)   # lane dim of x, sublane dim of weight
    N_pad = _round_up(N, 128)   # lane-dense output (unmasked vst)

    tm = _largest_divisor_tile(M_pad, 512, m_align)
    tn = _largest_divisor_tile(N_pad, 512, 128)
    tk = _largest_divisor_tile(K_pad, tk_target, 128)

    # Pad once in the wrapper; zero padding keeps the matmul exact.
    if (M_pad, K_pad) != (M, K):
        x2d = jnp.pad(x2d, ((0, M_pad - M), (0, K_pad - K)))
    w = weight
    if (K_pad, N_pad) != (K, N):
        w = jnp.pad(w, ((0, K_pad - K), (0, N_pad - N)))

    cost = pl.CostEstimate(
        flops=2 * M_pad * N_pad * K_pad,
        transcendentals=0,
        bytes_accessed=(M_pad * K_pad + K_pad * N_pad) * dsize
        + M_pad * N_pad * out_dsize,
    )

    # ---- resident-weight fast path ----------------------------------------
    weight_bytes = K_pad * N_pad * dsize
    resident_ws = (
        2 * tm * K_pad * dsize          # double-buffered x tiles
        + 2 * weight_bytes              # weight (counted conservatively at 2x)
        + 2 * tm * N_pad * out_dsize    # double-buffered output tiles
    )
    use_resident_w = (weight_bytes <= budget // 3) and (resident_ws <= budget)

    if use_resident_w:
        out2d = pl.pallas_call(
            _matmul_kernel_resident_w,
            out_shape=jax.ShapeDtypeStruct((M_pad, N_pad), out_dtype),
            grid_spec=pltpu.PrefetchScalarGridSpec(
                num_scalar_prefetch=0,
                grid=(M_pad // tm,),
                in_specs=[
                    pl.BlockSpec((tm, K_pad), lambda i: (i, 0)),
                    # Constant block index -> weight is DMA'd from HBM once and
                    # stays resident in VMEM across all M tiles.
                    pl.BlockSpec((K_pad, N_pad), lambda i: (0, 0)),
                ],
                out_specs=pl.BlockSpec((tm, N_pad), lambda i: (i, 0)),
            ),
            compiler_params=pltpu.CompilerParams(
                dimension_semantics=("parallel",),
                vmem_limit_bytes=vmem_limit,
            ),
            cost_estimate=cost,
        )(x2d, w)
    else:
        # ---- general K-tiled path ------------------------------------------
        def tiled_ws(tm_, tn_, tk_):
            ws = 2 * (tm_ * tk_ + tk_ * tn_) * dsize + 2 * tm_ * tn_ * out_dsize
            if not use_f32_out:
                ws += tm_ * tn_ * 4   # f32 scratch accumulator
            return ws

        # Shrink tk, then tn, then tm until the double-buffered working set
        # fits the per-generation VMEM budget.
        while tiled_ws(tm, tn, tk) > budget:
            if tk > 128:
                tk = _largest_divisor_tile(K_pad, tk // 2, 128)
            elif tn > 128:
                tn = _largest_divisor_tile(N_pad, tn // 2, 128)
            elif tm > m_align:
                tm = _largest_divisor_tile(M_pad, tm // 2, m_align)
            else:
                break

        # Megacore (v7x has 2 TensorCores): expose >= 2 parallel output tiles.
        if (M_pad // tm) * (N_pad // tn) == 1:
            if N_pad // 128 >= 2:
                tn = _largest_divisor_tile(N_pad, N_pad // 2, 128)
            elif M_pad // m_align >= 2:
                tm = _largest_divisor_tile(M_pad, M_pad // 2, m_align)

        grid = (M_pad // tm, N_pad // tn, K_pad // tk)
        kernel = _matmul_kernel_f32_out if use_f32_out else _matmul_kernel_scratch
        scratch = [] if use_f32_out else [pltpu.VMEM((tm, tn), jnp.float32)]

        out2d = pl.pallas_call(
            kernel,
            out_shape=jax.ShapeDtypeStruct((M_pad, N_pad), out_dtype),
            grid_spec=pltpu.PrefetchScalarGridSpec(
                num_scalar_prefetch=0,
                grid=grid,
                in_specs=[
                    pl.BlockSpec((tm, tk), lambda i, j, k: (i, k)),
                    pl.BlockSpec((tk, tn), lambda i, j, k: (k, j)),
                ],
                out_specs=pl.BlockSpec((tm, tn), lambda i, j, k: (i, j)),
                scratch_shapes=scratch,
            ),
            compiler_params=pltpu.CompilerParams(
                dimension_semantics=("parallel", "parallel", "arbitrary"),
                vmem_limit_bytes=vmem_limit,
            ),
            cost_estimate=cost,
        )(x2d, w)

    out2d = out2d[:M, :N]
    return out2d.reshape(*orig_shape[:-1], out_dim)


if __name__ == "__main__":
    key = jax.random.PRNGKey(0)
    kx, kw, kb = jax.random.split(key, 3)

    batch, seq, in_dim, out_dim = 2, 8, 32, 64
    x = jax.random.normal(kx, (batch, seq, in_dim), dtype=jnp.float32)
    weight = jax.random.normal(kw, (in_dim, out_dim), dtype=jnp.float32)
    bias = jax.random.normal(kb, (out_dim,), dtype=jnp.float32)

    out = my_linear(x, weight, bias)
    out = jax.block_until_ready(out)

    # Reference: the original forward returns x @ weight (bias add discarded).
    ref = x @ weight
    assert out.shape == ref.shape
    assert jnp.allclose(out, ref, atol=1e-4, rtol=1e-4), "mismatch vs reference"

    print("KERNEL_OK")
</pallas_src>

<mosaic_0001>
module attributes {stable_mosaic.version = 11 : i64} {
  func.func @_matmul_kernel_resident_w(%arg0: i32, %arg1: memref<16x128xf32, #tpu.memory_space<vmem>>, %arg2: memref<128x128xf32, #tpu.memory_space<vmem>>, %arg3: memref<16x128xf32, #tpu.memory_space<vmem>>) attributes {dimension_semantics = [#tpu.dimension_semantics<parallel>], iteration_bounds = array<i64: 1>, scalar_prefetch = 0 : i64, scratch_operands = 0 : i64, tpu.core_type = #tpu.core_type<tc>, window_params = [{transform_indices = @transform_0, window_bounds = array<i64: 16, 128>}, {pipeline_mode = #tpu.pipeline_mode<synchronous>, transform_indices = @transform_1, window_bounds = array<i64: 128, 128>}, {transform_indices = @transform_2, window_bounds = array<i64: 16, 128>}]} {
    %c0 = arith.constant 0 : index
    %c0_0 = arith.constant 0 : index
    %0 = vector.load %arg1[%c0, %c0_0] : memref<16x128xf32, #tpu.memory_space<vmem>>, vector<16x128xf32>
    %c0_1 = arith.constant 0 : index
    %c0_2 = arith.constant 0 : index
    %1 = vector.load %arg2[%c0_1, %c0_2] : memref<128x128xf32, #tpu.memory_space<vmem>>, vector<128x128xf32>
    %cst = arith.constant dense<0.000000e+00> : vector<16x128xf32>
    %2 = tpu.matmul %0, %1, %cst {dimension_numbers = #tpu.dot_dimension_numbers<[1], [0], [0], [1], [0, 0, 1, 1], [], []>} : vector<16x128xf32>, vector<128x128xf32>, vector<16x128xf32> -> vector<16x128xf32>
    %c0_3 = arith.constant 0 : index
    %c0_4 = arith.constant 0 : index
    %3 = vector.load %arg3[%c0_3, %c0_4] : memref<16x128xf32, #tpu.memory_space<vmem>>, vector<16x128xf32>
    tpu.vector_store %arg3[%c0_3, %c0_4], %2 {strides = array<i32>} : memref<16x128xf32, #tpu.memory_space<vmem>>, vector<16x128xf32>,
    return
  }
  func.func @transform_0(%arg0: i32) -> (i32, i32) {
    %c0_i32 = arith.constant 0 : i32
    %c0_i32_0 = arith.constant 0 : i32
    return %arg0, %c0_i32 : i32, i32
  }
  func.func @transform_1(%arg0: i32) -> (i32, i32) {
    %c0_i32 = arith.constant 0 : i32
    %c0_i32_0 = arith.constant 0 : i32
    %c0_i32_1 = arith.constant 0 : i32
    return %c0_i32, %c0_i32_0 : i32, i32
  }
  func.func @transform_2(%arg0: i32) -> (i32, i32) {
    %c0_i32 = arith.constant 0 : i32
    %c0_i32_0 = arith.constant 0 : i32
    return %arg0, %c0_i32 : i32, i32
  }
}

</mosaic_0001>

<bundles_post_ra>
// kernel: tpu_custom_call.1
= control target key start
LH: loop header
LB: loop body
LE: loop exit
PB: predicated region body
PF: predicated region fallthrough
CT: control target
= control target key end

     0   :  { %7 = vsyncpa [#allocation3], 0  ;;  %s244_s0 = inlined_call_operand.hbm [shape: f32[16,128], index: 0, kind: input, shape index: {}]   ;;  %s245_s1 = inlined_call_operand.hbm [shape: f32[128,128], index: 1, kind: input, shape index: {}]   ;;  %s246_s2 = inlined_call_operand.hbm [shape: f32[16,128], index: 2, kind: output, shape index: {}]  }
   0x1   :  { %8 = vsyncpa [#allocation6], 0 }
   0x2   :  { %9 = vsyncpa [#allocation4], 0  ;;  %s14_s11 = sshll.u32 %s244_s0, 4  ;;  %s206_s12 = smov [#allocation2]   ;;  %s15_s11 = int_to_ptr.hbm [resolvable:$true] %s14_s11 }
   0x3   :  { %s16_s13 = sshll.u32 %s206_s12, 4  ;;  %s27_s16 = sshll.u32 %s245_s1, 4  ;;  %s17_s13 = int_to_ptr.vmem [resolvable:$true] %s16_s13  ;;  %s28_s16 = int_to_ptr.hbm [resolvable:$true] %s27_s16 }
   0x4   :  { %s207_s17 = smov 128   ;;  %s208_s18 = smov 8  }
   0x5   :  { %22 = dma.hbm_to_vmem [thread:$0]  %s15_s11, 256, %s17_s13, [#allocation3], %s207_s17, %s207_s17, %s208_s18  }
   0x6   :  { %s209_s19 = smov [#allocation5]  }
   0x7   :  { %s29_s20 = sshll.u32 %s209_s19, 4  ;;  %s30_s20 = int_to_ptr.vmem [resolvable:$true] %s29_s20 }
   0x8   :  { %35 = dma.hbm_to_vmem [thread:$0]  %s28_s16, 2048, %s30_s20, [#allocation6], %s207_s17, %s207_s17, %s208_s18  }
   0x9   :  { %200 = dma.done.wait [#allocation3], 256  }
   0xa   :  { %201 = vsyncadd [#allocation3], 4294967040 }
   0xb   :  { %202 = dma.done.wait [#allocation6], 2048  }
   0xc   :  { %203 = vsyncadd [#allocation6], 4294965248  ;;  %v61_v0 = vld [vmem:[#allocation5 + $0x78] sm:$0xff]  ;;  %v60_v1 = vld [vmem:[#allocation5 + $0x70] sm:$0xff]  ;;  %s210_s0 = smov [#allocation7]   ;;  %s93_s23 = sshll.u32 %s246_s2, 4  ;;  %s94_s23 = int_to_ptr.hbm [resolvable:$true] %s93_s23 }
   0xd   :  { %62 = vmatpush.msra.mxu0 %v61_v0  ;;  %107 = vmatpush.msra.mxu1 %v61_v0  ;;  %v59_v2 = vld [vmem:[#allocation5 + $0x68] sm:$0xff]  ;;  %v58_v3 = vld [vmem:[#allocation5 + $0x60] sm:$0xff]  ;;  %v57_v4 = vld [vmem:[#allocation5 + $0x58] sm:$0xff]  ;;  %s91_s1 = sshll.u32 %s210_s0, 4  ;;  %s92_s1 = int_to_ptr.vmem [resolvable:$true] %s91_s1 }
   0xe   :  { %v56_v5 = vld [vmem:[#allocation5 + $0x50] sm:$0xff]  ;;  %v55_v6 = vld [vmem:[#allocation5 + $0x48] sm:$0xff]  ;;  %v54_v7 = vld [vmem:[#allocation5 + $0x40] sm:$0xff] }
   0xf   :  { %63 = vmatpush.msra.mxu0 %v60_v1  ;;  %108 = vmatpush.msra.mxu1 %v60_v1  ;;  %v53_v8 = vld [vmem:[#allocation5 + $0x38] sm:$0xff]  ;;  %v52_v9 = vld [vmem:[#allocation5 + $0x30] sm:$0xff]  ;;  %v51_v10 = vld [vmem:[#allocation5 + $0x28] sm:$0xff] }
  0x10   :  { %v50_v11 = vld [vmem:[#allocation5 + $0x20] sm:$0xff]  ;;  %v49_v12 = vld [vmem:[#allocation5 + $0x18] sm:$0xff]  ;;  %v48_v13 = vld [vmem:[#allocation5 + $0x10] sm:$0xff] }
  0x11   :  { %64 = vmatpush.msra.mxu0 %v59_v2  ;;  %109 = vmatpush.msra.mxu1 %v59_v2  ;;  %v47_v14 = vld [vmem:[#allocation5 + $0x8] sm:$0xff]  ;;  %v46_v15 = vld [vmem:[#allocation5] sm:$0xff]  ;;  %v44_v16 = vld [vmem:[#allocation2] sm:$0xff] }
  0x12   :  { %v45_v17 = vld [vmem:[#allocation2 + $0x8] sm:$0xff] }
  0x13   :  { %65 = vmatpush.msra.mxu0 %v58_v3  ;;  %110 = vmatpush.msra.mxu1 %v58_v3 }
  0x15   :  { %66 = vmatpush.msra.mxu0 %v57_v4  ;;  %111 = vmatpush.msra.mxu1 %v57_v4 }
  0x17   :  { %67 = vmatpush.msra.mxu0 %v56_v5  ;;  %112 = vmatpush.msra.mxu1 %v56_v5 }
  0x19   :  { %68 = vmatpush.msra.mxu0 %v55_v6  ;;  %113 = vmatpush.msra.mxu1 %v55_v6 }
  0x1b   :  { %69 = vmatpush.msra.mxu0 %v54_v7  ;;  %114 = vmatpush.msra.mxu1 %v54_v7 }
  0x1d   :  { %70 = vmatpush.msra.mxu0 %v53_v8  ;;  %115 = vmatpush.msra.mxu1 %v53_v8 }
  0x1f   :  { %71 = vmatpush.msra.mxu0 %v52_v9  ;;  %116 = vmatpush.msra.mxu1 %v52_v9 }
  0x21   :  { %72 = vmatpush.msra.mxu0 %v51_v10  ;;  %117 = vmatpush.msra.mxu1 %v51_v10 }
  0x23   :  { %73 = vmatpush.msra.mxu0 %v50_v11  ;;  %118 = vmatpush.msra.mxu1 %v50_v11 }
  0x25   :  { %74 = vmatpush.msra.mxu0 %v49_v12  ;;  %119 = vmatpush.msra.mxu1 %v49_v12 }
  0x27   :  { %75 = vmatpush.msra.mxu0 %v48_v13  ;;  %120 = vmatpush.msra.mxu1 %v48_v13 }
  0x29   :  { %76 = vmatpush.msra.mxu0 %v47_v14  ;;  %121 = vmatpush.msra.mxu1 %v47_v14 }
  0x2b   :  { %77 = vmatpush.msra.mxu0 %v46_v15  ;;  %122 = vmatpush.msra.mxu1 %v46_v15 }
  0x2c   :  { %78 = vmatmul.f32.vlgmr.msra.gmra.mxu0 %v44_v16  ;;  %81 = vmatmul.f32.vlgmr.msra.gmra.mxu1 %v45_v17 }
  0xa9   :  { %v79_v18 = vpop.f32.mrf.mxu0  ;;  %v82_v19 = vpop.f32.mrf.mxu1 }
  0xaa   :  { %85 = vst [vmem:[#allocation7] sm:$0xff] %v79_v18 }
  0xab   :  { %86 = vst [vmem:[#allocation7 + $0x8] sm:$0xff] %v82_v19 }
  0xac   :  { %99 = dma.vmem_to_hbm [thread:$0]  %s92_s1, 256, %s94_s23, [#allocation4], %s207_s17, %s207_s17, %s208_s18  }
  0xad   :  { %204 = dma.done.wait [#allocation4], 256  }
  0xae   :  { %205 = vsyncadd [#allocation4], 4294967040 }
  0xaf   :  { %104 = vsyncpa [#allocation3], 1 }
  0xb0   :  { %105 = vsyncpa [#allocation6], 1 }
  0xb1   :  { %106 = vsyncpa [#allocation4], 1 }

</bundles_post_ra>
